<compile_context>
chip_gen: v7x
topology: tpu7x:2x2x1
jax: 0.10.0
libtpu: 0.0.40
codegen_flags: <defaults>
</compile_context>

<pallas_src>
import jax
import jax.numpy as jnp
from jax.experimental import pallas as pl
from jax.experimental.pallas import tpu as pltpu

# ---- sizes (module: input 1 + 90 + 4 = 95, hidden, out 1) -------------------
STATE_SIZE = 91                      # 1 + 90
ACTION_SIZE = 4
IN_SIZE = STATE_SIZE + ACTION_SIZE   # 95
IN_PAD = 128                         # pad 95 -> 128 (lane multiple)

HIDDEN = 500                         # small demo size (module default is 10000)
HIDDEN_PAD = 512                     # padded to a tile multiple (10000 -> 10240 real)
BATCH = 16                           # fills bf16 sublane packing / MXU rows

# Demo tiles.  At the real HIDDEN=10240 use 2048x2048 (8 MB bf16 W2 tile,
# 16 MB double-buffered): 25 grid steps instead of 1600, DMA-overhead hidden,
# still well inside v7x's 64 MiB VMEM.
TILE_N = 256                         # fc2 output-column tile (j axis)
TILE_K = 256                         # fc2 reduction tile == fc1 output chunk (k axis)


def qnet_kernel(x_ref, w1_ref, b1_ref, w2_ref, b2_ref, w3_ref, o_ref, acc_ref):
    # Grid: (j, k) = (fc2 N tile, fc2 K tile).  Reduction axis (k) is last.
    # Only W2 is streamed; x / W1 / b1 / b2 / w3 are VMEM-resident and sliced here.
    j = pl.program_id(0)
    k = pl.program_id(1)
    nk = pl.num_programs(1)
    tile_k, tile_n = w2_ref.shape

    # Zero the fc2 partial accumulator at the start of every K sweep.
    @pl.when(k == 0)
    def _():
        acc_ref[...] = jnp.zeros_like(acc_ref)

    # fc1 chunk (bf16 MXU, f32 accumulate), sliced from the resident W1/b1:
    #   h1_k = relu(x @ W1[:, k_tile] + b1[k_tile])
    # Recomputed per (j, k); W1 chunk matmul is tiny vs. the W2 stream.
    kk = pl.multiple_of(k * tile_k, tile_k)
    h1 = jnp.dot(x_ref[...], w1_ref[:, pl.ds(kk, tile_k)],
                 preferred_element_type=jnp.float32) + b1_ref[:, pl.ds(kk, tile_k)]
    h1 = jnp.maximum(h1, 0.0).astype(jnp.bfloat16)
    # TODO(synk): training-mode dropout(p=0.5) after fc1 is omitted (this matches
    # eval()/inference); it would be pltpu.prng_seed + prng_random_bits mask + 2x rescale.

    # fc2 partial: acc[:, j_tile] += h1_k @ W2[k_tile, j_tile]   (f32 accumulation)
    acc_ref[...] += jnp.dot(h1, w2_ref[...], preferred_element_type=jnp.float32)

    # After the last K tile: fc2 bias + relu, then fc3 folded into a lane reduction
    # against the resident W3 row chunk.  Per-j partial written to its own output
    # block (no cross-j accumulation -> j axis is megacore-parallel).
    @pl.when(k == nk - 1)
    def _():
        jj = pl.multiple_of(j * tile_n, tile_n)
        h2 = jnp.maximum(acc_ref[...] + b2_ref[:, pl.ds(jj, tile_n)], 0.0)   # (B, tile_n) f32
        w3j = w3_ref[:, pl.ds(jj, tile_n)].astype(jnp.float32)               # (1, tile_n)
        partial = jnp.sum(h2 * w3j, axis=-1, keepdims=True)                  # (B, 1)
        o_ref[...] = partial[None]                                           # (1, B, 1)


def qnet_forward(x_pad, w1, b1, w2, b2, w3_row, b3, *, tile_n=TILE_N, tile_k=TILE_K):
    """x_pad: (B, IN_PAD) bf16.  Returns (B, 1) f32 Q-values."""
    B, in_pad = x_pad.shape
    hidden_pad = w2.shape[0]
    J = hidden_pad // tile_n
    K = hidden_pad // tile_k

    # Explicit VMEM budget (resident weights + double-buffered W2 tile + scratch),
    # sized so the real-HIDDEN / 2048-tile configuration still fits v7x's 64 MiB.
    resident_bytes = (
        2 * (in_pad * hidden_pad * 2)          # W1 bf16 (x2 buffers)
        + 2 * (2 * hidden_pad * 4 + hidden_pad * 2)  # b1, b2 (f32) + w3 (bf16)
        + 2 * (B * in_pad * 2)                 # x bf16
    )
    stream_bytes = 2 * (tile_k * tile_n * 2)   # W2 double buffer (bf16)
    scratch_bytes = B * tile_n * 4 + 2 * (J * B * 4)
    vmem_limit = min(48 << 20, max(16 << 20,
                                   2 * (resident_bytes + stream_bytes + scratch_bytes)))

    out = pl.pallas_call(
        qnet_kernel,
        out_shape=jax.ShapeDtypeStruct((J, B, 1), jnp.float32),
        grid_spec=pltpu.PrefetchScalarGridSpec(
            num_scalar_prefetch=0,
            grid=(J, K),
            in_specs=[
                # Resident (constant index_map -> DMA'd once, stays in VMEM):
                pl.BlockSpec((B, in_pad), lambda j, k: (0, 0)),           # x
                pl.BlockSpec((in_pad, hidden_pad), lambda j, k: (0, 0)),  # W1 (full)
                pl.BlockSpec((1, hidden_pad), lambda j, k: (0, 0)),       # b1 (full)
                # Streamed (the dominant HBM traffic):
                pl.BlockSpec((tile_k, tile_n), lambda j, k: (k, j)),      # W2 tile
                # Resident:
                pl.BlockSpec((1, hidden_pad), lambda j, k: (0, 0)),       # b2 (full)
                pl.BlockSpec((1, hidden_pad), lambda j, k: (0, 0)),       # W3 row (full)
            ],
            out_specs=pl.BlockSpec((1, B, 1), lambda j, k: (j, 0, 0)),    # per-j partial
            scratch_shapes=[pltpu.VMEM((B, tile_n), jnp.float32)],        # fc2 accumulator
        ),
        # j axis has no cross-iteration state anymore -> parallel (v7x megacore);
        # k is the in-VMEM reduction -> arbitrary.
        compiler_params=pltpu.CompilerParams(
            dimension_semantics=("parallel", "arbitrary"),
            vmem_limit_bytes=int(vmem_limit),
        ),
    )(x_pad, w1, b1, w2, b2, w3_row)

    # Sum the per-j partials and add the fc3 bias once, outside the kernel.
    return jnp.sum(out, axis=0) + b3


def make_params(key, hidden=HIDDEN, hidden_pad=HIDDEN_PAD):
    """PyTorch-style Linear init U(-1/sqrt(fan_in), 1/sqrt(fan_in)).
    Returns (kernel_params, logical_params):
      kernel_params : (in, out) layout, zero-padded everywhere, weights cast to bf16
                      once here (biases stay f32).
      logical_params: unpadded f32 params for the plain-JAX reference.
    """
    k1, k2, k3, k4, k5, k6 = jax.random.split(key, 6)

    def linear(kw, kb, fan_in, fan_out):
        bound = 1.0 / (float(fan_in) ** 0.5)
        w = jax.random.uniform(kw, (fan_in, fan_out), jnp.float32, -bound, bound)
        b = jax.random.uniform(kb, (1, fan_out), jnp.float32, -bound, bound)
        return w, b

    w1, b1 = linear(k1, k2, IN_SIZE, hidden)
    w2, b2 = linear(k3, k4, hidden, hidden)
    w3, b3 = linear(k5, k6, hidden, 1)
    w3_row = w3.T                                  # (1, hidden)

    logical = (w1, b1, w2, b2, w3_row, b3)

    ph = hidden_pad - hidden
    # Zero-pad everything so padded input lanes / hidden units contribute exactly 0:
    #   relu(0 + 0) = 0, 0 * W2_pad = 0, relu(0 + 0) * 0 = 0.
    w1_p = jnp.pad(w1, ((0, IN_PAD - IN_SIZE), (0, ph))).astype(jnp.bfloat16)
    b1_p = jnp.pad(b1, ((0, 0), (0, ph)))                       # f32
    w2_p = jnp.pad(w2, ((0, ph), (0, ph))).astype(jnp.bfloat16)
    b2_p = jnp.pad(b2, ((0, 0), (0, ph)))                       # f32
    w3_p = jnp.pad(w3_row, ((0, 0), (0, ph))).astype(jnp.bfloat16)
    kernel_params = (w1_p, b1_p, w2_p, b2_p, w3_p, b3)          # b3: (1, 1) f32
    return kernel_params, logical


def reference_forward(x_bf16, w1, b1, w2, b2, w3_row, b3):
    """Plain-JAX reference on the UNPADDED params, with the same quantization
    points as the kernel (bf16 weights/activations into the MXU, f32 accumulation)."""
    h1 = jnp.maximum(jnp.dot(x_bf16, w1.astype(jnp.bfloat16),
                             preferred_element_type=jnp.float32) + b1, 0.0)
    h1 = h1.astype(jnp.bfloat16)
    h2 = jnp.maximum(jnp.dot(h1, w2.astype(jnp.bfloat16),
                             preferred_element_type=jnp.float32) + b2, 0.0)
    w3f = w3_row.astype(jnp.bfloat16).astype(jnp.float32)
    return jnp.sum(h2 * w3f, axis=-1, keepdims=True) + b3


if __name__ == "__main__":
    key = jax.random.PRNGKey(0)
    kp, ks, ka = jax.random.split(key, 3)

    kernel_params, logical_params = make_params(kp)

    # Batched (state, action) pairs; per-row semantics match torch.cat((state, action)).
    state = jax.random.normal(ks, (BATCH, STATE_SIZE), jnp.float32)
    action = jax.random.normal(ka, (BATCH, ACTION_SIZE), jnp.float32)
    x = jnp.concatenate([state, action], axis=-1)                       # (B, 95)
    x_pad = jnp.pad(x, ((0, 0), (0, IN_PAD - IN_SIZE))).astype(jnp.bfloat16)

    q = qnet_forward(x_pad, *kernel_params)                             # (B, 1)
    q = jax.block_until_ready(q)

    ref = reference_forward(x.astype(jnp.bfloat16), *logical_params)
    assert q.shape == (BATCH, 1), q.shape
    assert jnp.allclose(q, ref, atol=2e-2, rtol=2e-2), (q, ref)

    print("KERNEL_OK")
</pallas_src>

<mosaic_0001>
module attributes {stable_mosaic.version = 11 : i64} {
  func.func @qnet_kernel(%arg0: i32, %arg1: i32, %arg2: memref<16x128xbf16, #tpu.memory_space<vmem>>, %arg3: memref<128x512xbf16, #tpu.memory_space<vmem>>, %arg4: memref<1x512xf32, #tpu.memory_space<vmem>>, %arg5: memref<256x256xbf16, #tpu.memory_space<vmem>>, %arg6: memref<1x512xf32, #tpu.memory_space<vmem>>, %arg7: memref<1x512xbf16, #tpu.memory_space<vmem>>, %arg8: memref<1x16x1xf32, #tpu.memory_space<vmem>>, %arg9: memref<16x256xf32, #tpu.memory_space<vmem>>) attributes {dimension_semantics = [#tpu.dimension_semantics<parallel>, #tpu.dimension_semantics<arbitrary>], iteration_bounds = array<i64: 2, 2>, scalar_prefetch = 0 : i64, scratch_operands = 1 : i64, tpu.core_type = #tpu.core_type<tc>, window_params = [{pipeline_mode = #tpu.pipeline_mode<synchronous>, transform_indices = @transform_0, window_bounds = array<i64: 16, 128>}, {pipeline_mode = #tpu.pipeline_mode<synchronous>, transform_indices = @transform_1, window_bounds = array<i64: 128, 512>}, {pipeline_mode = #tpu.pipeline_mode<synchronous>, transform_indices = @transform_2, window_bounds = array<i64: 1, 512>}, {transform_indices = @transform_3, window_bounds = array<i64: 256, 256>}, {pipeline_mode = #tpu.pipeline_mode<synchronous>, transform_indices = @transform_4, window_bounds = array<i64: 1, 512>}, {pipeline_mode = #tpu.pipeline_mode<synchronous>, transform_indices = @transform_5, window_bounds = array<i64: 1, 512>}, {transform_indices = @transform_6, window_bounds = array<i64: 1, 16, 1>}]} {
    %c0_i32 = arith.constant 0 : i32
    %0 = arith.cmpi eq, %arg1, %c0_i32 : i32
    %1 = arith.extui %0 : i1 to i32
    %c0_i32_0 = arith.constant 0 : i32
    %2 = arith.cmpi ne, %1, %c0_i32_0 : i32
    scf.if %2 {
      %cst_13 = arith.constant 0.000000e+00 : f32
      %24 = vector.broadcast %cst_13 : f32 to vector<16x256xf32>
      %c0_14 = arith.constant 0 : index
      %c0_15 = arith.constant 0 : index
      %25 = vector.load %arg9[%c0_14, %c0_15] : memref<16x256xf32, #tpu.memory_space<vmem>>, vector<16x256xf32>
      tpu.vector_store %arg9[%c0_14, %c0_15], %24 {strides = array<i32>} : memref<16x256xf32, #tpu.memory_space<vmem>>, vector<16x256xf32>,
    } else {
    }
    %c256_i32 = arith.constant 256 : i32
    %3 = arith.muli %arg1, %c256_i32 : i32
    %4 = tpu.assume_multiple %3, 256 : i32
    %c0 = arith.constant 0 : index
    %c0_1 = arith.constant 0 : index
    %5 = vector.load %arg2[%c0, %c0_1] : memref<16x128xbf16, #tpu.memory_space<vmem>>, vector<16x128xbf16>
    %c0_2 = arith.constant 0 : index
    %6 = arith.index_cast %4 : i32 to index
    %7 = vector.load %arg3[%c0_2, %6] : memref<128x512xbf16, #tpu.memory_space<vmem>>, vector<128x256xbf16>
    %cst = arith.constant dense<0.000000e+00> : vector<16x256xf32>
    %8 = tpu.matmul %5, %7, %cst {dimension_numbers = #tpu.dot_dimension_numbers<[1], [0], [0], [1], [0, 0, 1, 1], [], []>} : vector<16x128xbf16>, vector<128x256xbf16>, vector<16x256xf32> -> vector<16x256xf32>
    %c0_3 = arith.constant 0 : index
    %9 = arith.index_cast %4 : i32 to index
    %10 = vector.load %arg4[%c0_3, %9] : memref<1x512xf32, #tpu.memory_space<vmem>>, vector<1x256xf32>
    %11 = vector.broadcast %10 : vector<1x256xf32> to vector<16x256xf32>
    %12 = arith.addf %8, %11 : vector<16x256xf32>
    %cst_4 = arith.constant 0.000000e+00 : f32
    %13 = vector.broadcast %cst_4 : f32 to vector<16x256xf32>
    %14 = arith.maximumf %12, %13 : vector<16x256xf32>
    %15 = arith.truncf %14 : vector<16x256xf32> to vector<16x256xbf16>
    %c0_5 = arith.constant 0 : index
    %c0_6 = arith.constant 0 : index
    %16 = vector.load %arg9[%c0_5, %c0_6] : memref<16x256xf32, #tpu.memory_space<vmem>>, vector<16x256xf32>
    %c0_7 = arith.constant 0 : index
    %c0_8 = arith.constant 0 : index
    %17 = vector.load %arg5[%c0_7, %c0_8] : memref<256x256xbf16, #tpu.memory_space<vmem>>, vector<256x256xbf16>
    %cst_9 = arith.constant dense<0.000000e+00> : vector<16x256xf32>
    %18 = tpu.matmul %15, %17, %cst_9 {dimension_numbers = #tpu.dot_dimension_numbers<[1], [0], [0], [1], [0, 0, 1, 1], [], []>} : vector<16x256xbf16>, vector<256x256xbf16>, vector<16x256xf32> -> vector<16x256xf32>
    %19 = arith.addf %16, %18 : vector<16x256xf32>
    %c0_10 = arith.constant 0 : index
    %c0_11 = arith.constant 0 : index
    %20 = vector.load %arg9[%c0_10, %c0_11] : memref<16x256xf32, #tpu.memory_space<vmem>>, vector<16x256xf32>
    tpu.vector_store %arg9[%c0_10, %c0_11], %19 {strides = array<i32>} : memref<16x256xf32, #tpu.memory_space<vmem>>, vector<16x256xf32>,
    %c1_i32 = arith.constant 1 : i32
    %21 = arith.cmpi eq, %arg1, %c1_i32 : i32
    %22 = arith.extui %21 : i1 to i32
    %c0_i32_12 = arith.constant 0 : i32
    %23 = arith.cmpi ne, %22, %c0_i32_12 : i32
    scf.if %23 {
      %c256_i32_13 = arith.constant 256 : i32
      %24 = arith.muli %arg0, %c256_i32_13 : i32
      %25 = tpu.assume_multiple %24, 256 : i32
      %c0_14 = arith.constant 0 : index
      %c0_15 = arith.constant 0 : index
      %26 = vector.load %arg9[%c0_14, %c0_15] : memref<16x256xf32, #tpu.memory_space<vmem>>, vector<16x256xf32>
      %c0_16 = arith.constant 0 : index
      %27 = arith.index_cast %25 : i32 to index
      %28 = vector.load %arg6[%c0_16, %27] : memref<1x512xf32, #tpu.memory_space<vmem>>, vector<1x256xf32>
      %29 = vector.broadcast %28 : vector<1x256xf32> to vector<16x256xf32>
      %30 = arith.addf %26, %29 : vector<16x256xf32>
      %cst_17 = arith.constant 0.000000e+00 : f32
      %31 = vector.broadcast %cst_17 : f32 to vector<16x256xf32>
      %32 = arith.maximumf %30, %31 : vector<16x256xf32>
      %c0_18 = arith.constant 0 : index
      %33 = arith.index_cast %25 : i32 to index
      %34 = vector.load %arg7[%c0_18, %33] : memref<1x512xbf16, #tpu.memory_space<vmem>>, vector<1x256xbf16>
      %35 = arith.extf %34 : vector<1x256xbf16> to vector<1x256xf32>
      %36 = vector.broadcast %35 : vector<1x256xf32> to vector<16x256xf32>
      %37 = arith.mulf %32, %36 : vector<16x256xf32>
      %cst_19 = arith.constant dense<0.000000e+00> : vector<16xf32>
      %38 = vector.multi_reduction <add>, %37, %cst_19 [1] : vector<16x256xf32> to vector<16xf32>
      %39 = vector.shape_cast %38 : vector<16xf32> to vector<16x1xf32>
      %40 = vector.shape_cast %39 : vector<16x1xf32> to vector<1x16x1xf32>
      %c0_20 = arith.constant 0 : index
      %c0_21 = arith.constant 0 : index
      %c0_22 = arith.constant 0 : index
      %41 = vector.load %arg8[%c0_20, %c0_21, %c0_22] : memref<1x16x1xf32, #tpu.memory_space<vmem>>, vector<1x16x1xf32>
      tpu.vector_store %arg8[%c0_20, %c0_21, %c0_22], %40 {strides = array<i32>} : memref<1x16x1xf32, #tpu.memory_space<vmem>>, vector<1x16x1xf32>,
    } else {
    }
    return
  }
  func.func @transform_0(%arg0: i32, %arg1: i32) -> (i32, i32) {
    %c0_i32 = arith.constant 0 : i32
    %c0_i32_0 = arith.constant 0 : i32
    %c0_i32_1 = arith.constant 0 : i32
    return %c0_i32, %c0_i32_0 : i32, i32
  }
  func.func @transform_1(%arg0: i32, %arg1: i32) -> (i32, i32) {
    %c0_i32 = arith.constant 0 : i32
    %c0_i32_0 = arith.constant 0 : i32
    %c0_i32_1 = arith.constant 0 : i32
    return %c0_i32, %c0_i32_0 : i32, i32
  }
  func.func @transform_2(%arg0: i32, %arg1: i32) -> (i32, i32) {
    %c0_i32 = arith.constant 0 : i32
    %c0_i32_0 = arith.constant 0 : i32
    %c0_i32_1 = arith.constant 0 : i32
    return %c0_i32, %c0_i32_0 : i32, i32
  }
  func.func @transform_3(%arg0: i32, %arg1: i32) -> (i32, i32) {
    %c0_i32 = arith.constant 0 : i32
    return %arg1, %arg0 : i32, i32
  }
  func.func @transform_4(%arg0: i32, %arg1: i32) -> (i32, i32) {
    %c0_i32 = arith.constant 0 : i32
    %c0_i32_0 = arith.constant 0 : i32
    %c0_i32_1 = arith.constant 0 : i32
    return %c0_i32, %c0_i32_0 : i32, i32
  }
  func.func @transform_5(%arg0: i32, %arg1: i32) -> (i32, i32) {
    %c0_i32 = arith.constant 0 : i32
    %c0_i32_0 = arith.constant 0 : i32
    %c0_i32_1 = arith.constant 0 : i32
    return %c0_i32, %c0_i32_0 : i32, i32
  }
  func.func @transform_6(%arg0: i32, %arg1: i32) -> (i32, i32, i32) {
    %c0_i32 = arith.constant 0 : i32
    %c0_i32_0 = arith.constant 0 : i32
    %c0_i32_1 = arith.constant 0 : i32
    return %arg0, %c0_i32, %c0_i32_0 : i32, i32, i32
  }
}

</mosaic_0001>

<bundles_post_ra>
// kernel: tpu_custom_call.1
= control target key start
LH: loop header
LB: loop body
LE: loop exit
PB: predicated region body
PF: predicated region fallthrough
CT: control target
= control target key end

     0   :  { %s1681_s0 = inlined_call_operand.hbm [shape: bf16[16,128], index: 0, kind: input, shape index: {}]   ;;  %s1682_s1 = inlined_call_operand.hbm [shape: bf16[128,512], index: 1, kind: input, shape index: {}]   ;;  %s1683_s2 = inlined_call_operand.vmem [shape: f32[1,512], index: 2, kind: input, shape index: {}]   ;;  %s1684_s3 = inlined_call_operand.hbm [shape: bf16[512,512], index: 3, kind: input, shape index: {}]   ;;  %s1685_s4 = inlined_call_operand.vmem [shape: f32[1,512], index: 4, kind: input, shape index: {}]   ;;  %s1686_s5 = inlined_call_operand.vmem [shape: bf16[1,512], index: 5, kind: input, shape index: {}]   ;;  %s1687_s6 = inlined_call_operand.vmem [shape: f32[2,16,1], index: 6, kind: output, shape index: {}]  }
   0x1   :  { %1695 = sst [smem:[#allocation13_spill]] %s1681_s0 }
   0x2   :  { %1696 = sst [smem:[#allocation14_spill]] %s1682_s1 }
   0x3   :  { %1697 = sst [smem:[#allocation15_spill]] %s1686_s5 }
   0x4   :  { %11 = vsyncpa [#allocation4], 0 }
   0x5   :  { %12 = vsyncpa [#allocation6], 0  ;;  %s1373_s21 = smov 0   ;;  %s1375_s22 = smov 0  }
   0x6   :  { %s1377_s23 = smov 0   ;;  %s1379_s24 = smov 0  }
   0x7   :  { %s1381_s25 = smov 0   ;;  %s1383_s26 = smov 0  }
   0x8   :  { %s1385_s27 = smov 0   ;;  %s1387_s28 = smov 0  }
   0x9 LB: > { %1698 = sst [smem:[#allocation11_spill]] %s1317_s26  ;;  %s1691_s29 = sadd.s32 4294967295, %s1325_s28   ;;  %s1325_s28 = sphi %s1387_s28, %s18_s28   ;;  %s1321_s27 = sphi %s1385_s27, %s1720_s27   ;;  %s1317_s26 = sphi %s1383_s26, %s1719_s26   ;;  %s1313_s25 = sphi %s1381_s25, %s1718_s25   ;;  %s1309_s24 = sphi %s1379_s24, %s1713_s24   ;;  %s1305_s23 = sphi %s1377_s23, %s1717_s23   ;;  %s1301_s22 = sphi %s1375_s22, %s1716_s22   ;;  %s1297_s21 = sphi %s1373_s21, %s1715_s21  }
   0xa   : > { %p109_p0 = scmp.ne.s32.totalorder %s1305_s23, %s1301_s22  ;;  %p110_p1 = scmp.eq.s32.totalorder %s1325_s28, 0 }
   0xb   : > { %p115_p2 = scmp.ne.s32.totalorder %s1301_s22, %s1297_s21  ;;  %p1419_p3 = scmp.eq.s32.totalorder %s1691_s29, 0 }
   0xc   : > { %p111_p4 = por %p110_p1, %p109_p0  ;;  %p919_p5 = scmp.ge.s32.totalorder %s1325_s28, 1 }
   0xd   : > { %s1699_s7 = scalar_select %p1419_p3, 1, 0 }
   0xe   : > { %p1426_p6 = por %p1419_p3, %p115_p2  ;;  %p194_p7 = scmp.lt.s32.totalorder %s1325_s28, 5 }
   0xf   : > { %s1327_s10 = smov [#allocation3]   ;;  %p1015_p10 = scmp.lt.s32.totalorder %s1325_s28, 4 }
  0x10   : > { %s1700_s8 = scalar_select %p1426_p6, 1, 0 }
  0x11   : > { %p1431_p8 = pnand %p919_p5, %p194_p7  ;;  %s206_s11 = sshll.u32 %s1327_s10, 4  ;;  %s1435_s11 = int_to_ptr.vmem [resolvable:$true] %s206_s11 }
  0x12   : > { %p1446_p12 = pnand %p1015_p10, %p111_p4  ;;  %s1328_s14 = smov [#allocation5]  }
  0x13   : > { %p1002_p9 = pneg %p1431_p8  ;;  %s219_s15 = sshll.u32 %s1328_s14, 4  ;;  %s1450_s15 = int_to_ptr.vmem [resolvable:$true] %s219_s15 }
  0x14   : > { %s1704_s0 = sld [smem:[#allocation13_spill]] }
  0x15   : > { %p1442_p11 = pnand %p1002_p9, %p1419_p3 }
  0x17   : > { %p1167_p0 = pneg %p1442_p11 }
  0x1a   : > { %s1165_s18 = scalar_lea.hbm %s1704_s0, 128 }
  0x1b   : > { %p1166_p13 = scmp.ne.s32.totalorder %s1704_s0, %s1165_s18  ;;  %p1172_p4 = scmp.lt.u32.totalorder %s1165_s18, %s1704_s0 }
  0x1d   : > { %p1168_p1 = pnand %p1167_p0, %p1166_p13 }
  0x1f   : > { %p1169_p2 = pneg %p1168_p1 }
  0x21   : > { %p1174_p5 = pnand %p1172_p4, %p1169_p2 }
  0x23   : > { %1177 = shalt.err (!%p1174_p5)
}
  0x24   : > { %s1178_s14 = scalar_lea.vmem %s1435_s11, 128  ;;  %p1186_p6 = scmp.lt.s32.totalorder %s1435_s11, %s1435_s11 }
  0x25   : > { %p1179_p7 = scmp.ne.s32.totalorder %s1435_s11, %s1178_s14  ;;  %p1187_p13 = scmp.lt.s32.totalorder %s1178_s14, %s1178_s14 }
  0x27   : > { %p1181_p9 = pnand %p1179_p7, %p1167_p0  ;;  %p1188_p1 = por %p1187_p13, %p1186_p6 }
  0x29   : > { %p1182_p10 = pneg %p1181_p9 }
  0x2b   : > { %p1189_p3 = pnand %p1188_p1, %p1182_p10 }
  0x2d   : > { %1192 = shalt.err (!%p1189_p3)
}
  0x2e   : > { %s1329_s16 = smov 64   ;;  %s1330_s17 = smov 4  }
  0x2f   : > { %1005 = dma.hbm_to_vmem [thread:$0]  (!%p1442_p11), %s1704_s0, 128, %s1435_s11, [#allocation4], %s1329_s16, %s1329_s16, %s1330_s17  }
  0x30   : > { %s1705_s1 = sld [smem:[#allocation14_spill]] }
  0x36   : > { %s1193_s10 = scalar_lea.hbm %s1705_s1, 4096 }
  0x37   : > { %p1194_p6 = scmp.ne.s32.totalorder %s1705_s1, %s1193_s10  ;;  %p1200_p4 = scmp.lt.u32.totalorder %s1193_s10, %s1705_s1 }
  0x39   : > { %p1196_p3 = pnand %p1194_p6, %p1167_p0 }
  0x3b   : > { %p1197_p2 = pneg %p1196_p3 }
  0x3d   : > { %p1202_p5 = pnand %p1200_p4, %p1197_p2 }
  0x3f   : > { %1205 = shalt.err (!%p1202_p5)
}
  0x40   : > { %s1206_s11 = scalar_lea.vmem %s1450_s15, 4096  ;;  %p1214_p13 = scmp.lt.s32.totalorder %s1450_s15, %s1450_s15 }
  0x41   : > { %p1207_p7 = scmp.ne.s32.totalorder %s1450_s15, %s1206_s11  ;;  %p1215_p1 = scmp.lt.s32.totalorder %s1206_s11, %s1206_s11 }
  0x43   : > { %p1209_p9 = pnand %p1207_p7, %p1167_p0  ;;  %p1216_p6 = por %p1215_p1, %p1214_p13 }
  0x45   : > { %p1210_p10 = pneg %p1209_p9 }
  0x47   : > { %p1217_p3 = pnand %p1216_p6, %p1210_p10 }
  0x49   : > { %1220 = shalt.err (!%p1217_p3)
}
  0x4a   : > { %s1692_s5 = smov 256   ;;  %s1332_s29 = smov 16  }
  0x4b   : > { %1008 = dma.hbm_to_vmem [thread:$0]  (!%p1442_p11), %s1705_s1, 4096, %s1450_s15, [#allocation6], %s1692_s5, %s1692_s5, %s1332_s29  }
  0x4c   : > { %s27_s17 = sadd.s32 1, %s1317_s26  ;;  %s30_s18 = sadd.s32 1, %s1321_s27 }
  0x4d   : > { %p28_p0 = scmp.ge.s32.totalorder %s27_s17, 2  ;;  %s242_s19 = sand.u32 1, %s1325_s28  }
  0x4e   : > { %s244_s20 = sand.u32 1, %s1305_s23   ;;  %s925_s10 = sshll.u32 %s1321_s27, 1 }
  0x4f   : > { %s1722_s17 = smov (%p28_p0, %s27_s17), 0  ;;  %s1724_s18 = smov (!%p28_p0, %s30_s18), %s1321_s27 }
  0x50   : > { %1706 = sst [smem:[#allocation12_spill]] %s1722_s17  ;;  %s97_s21 = ssub.s32 %s1317_s26, %s1722_s17 }
  0x51   : > { %p32_p2 = scmp.ge.s32.totalorder %s1724_s18, 2  ;;  %s923_s12 = sshll.u32 %s244_s20, 8 }
  0x52   : > { %s990_s15 = sshll.u32 %s1317_s26, 7  ;;  %s246_s14 = scalar_lea.vmem [#allocation7], %s923_s12 }
  0x53   : > { %s1726_s18 = smov (%p32_p2, %s1724_s18), 0  ;;  %s256_s11 = sshll.u32 %s246_s14, 4  ;;  %s1526_s11 = int_to_ptr.vmem [resolvable:$true] %s256_s11 }
  0x54   : > { %s98_s29 = ssub.s32 %s1321_s27, %s1726_s18  ;;  %s253_s30 = sadd.s32 %s990_s15, %s925_s10 }
  0x55   : > { %s99_s16 = sor.u32 %s98_s29, %s97_s21  ;;  %s927_s5 = sshll.u32 %s253_s30, 6 }
  0x56   : > { %p100_p11 = scmp.eq.s32.totalorder %s99_s16, 0  ;;  %s1524_s17 = scalar_lea.hbm %s1684_s3, %s927_s5 }
  0x57   : > { %s1707_s20 = sadd.s32 1, %s1305_s23  ;;  %s1533_s12 = scalar_lea.sflag [#allocation4], %s242_s19 }
  0x58   : > { %s1531_s26 = scalar_select %p100_p11, %s1305_s23, %s1707_s20  }
  0x59   : > { %s1221_s10 = scalar_lea.hbm %s1524_s17, 4096  ;;  %p1223_p5 = pneg %p1446_p12 }
  0x5a   : > { %p1222_p4 = scmp.ne.s32.totalorder %s1524_s17, %s1221_s10  ;;  %s1226_s5 = scalar_lea.hbm %s1684_s3, 16384 }
  0x5b   : > { %p1227_p10 = scmp.lt.u32.totalorder %s1524_s17, %s1684_s3  ;;  %p1228_p13 = scmp.lt.u32.totalorder %s1226_s5, %s1221_s10 }
  0x5c   : > { %p1224_p7 = pnand %p1223_p5, %p1222_p4  ;;  %p1230_p6 = scmp.lt.u32.totalorder %s1221_s10, %s1524_s17 }
  0x5d   : > { %p1229_p1 = por %p1228_p13, %p1227_p10 }
  0x5e   : > { %p1225_p9 = pneg %p1224_p7 }
  0x5f   : > { %p1231_p3 = por %p1230_p6, %p1229_p1 }
  0x61   : > { %p1232_p0 = pnand %p1231_p3, %p1225_p9 }
  0x63   : > { %1235 = shalt.err (!%p1232_p0)
}
  0x64   : > { %s1236_s19 = scalar_lea.vmem %s1526_s11, 4096  ;;  %s1333_s14 = smov [#allocation7]  }
  0x65   : > { %p1237_p2 = scmp.ne.s32.totalorder %s1526_s11, %s1236_s19  ;;  %s1241_s29 = sshll.u32 %s1333_s14, 4  ;;  %s1242_s29 = int_to_ptr.vmem [resolvable:$false] %s1241_s29 }
  0x66   : > { %s1243_s30 = scalar_lea.vmem %s1242_s29, 8192  ;;  %p1244_p7 = scmp.lt.s32.totalorder %s1526_s11, %s1242_s29 }
  0x67   : > { %p1239_p11 = pnand %p1237_p2, %p1223_p5  ;;  %p1245_p10 = scmp.lt.s32.totalorder %s1243_s30, %s1236_s19 }
  0x69   : > { %p1240_p4 = pneg %p1239_p11  ;;  %p1246_p13 = por %p1245_p10, %p1244_p7 }
  0x6b   : > { %p1247_p1 = pnand %p1246_p13, %p1240_p4 }
  0x6d   : > { %1250 = shalt.err (!%p1247_p1)
}
  0x6e   : > { %s1334_s16 = smov 128   ;;  %s1335_s20 = smov 8  }
  0x6f   : > { %s1708_s10 = smov 256   ;;  %268 = sbr.rel (%p1431_p8) target bundleno = 774 (0x306), region = 44 }
  0x70   : > { %1012 = dma.hbm_to_vmem [thread:$0]  (!%p1446_p12), %s1524_s17, 4096, %s1526_s11, %s1533_s12, %s1708_s10, %s1334_s16, %s1335_s20  }
  0x71   : > { %p1709_p5 = scmp.ne.s32.totalorder (!%p1431_p8), %s1699_s7, 0 }
  0x76   : > { %1284 = dma.done.wait (%p1709_p5), [#allocation4], 128  }
  0x77   : > { %1286 = vsyncadd (%p1709_p5), [#allocation4], 4294967168 }
  0x78   : > { %1288 = dma.done.wait (%p1709_p5), [#allocation6], 4096  }
  0x79   : > { %1290 = vsyncadd (%p1709_p5), [#allocation6], 4294963200  ;;  %s1710_s0 = sadd.s32 4294967295, %s1325_s28   ;;  %s280_s17 = sand.u32 1, %s1301_s22  }
  0x7a   : > { %s278_s13 = sand.u32 1, %s1710_s0   ;;  %s931_s9 = sshll.u32 %s280_s17, 8 }
  0x7b   : > { %s279_s11 = scalar_lea.sflag [#allocation4], %s278_s13  ;;  %s1575_s12 = scalar_lea.vmem [#allocation7], %s931_s9 }
  0x7c   : > { %p1711_p8 = scmp.ne.s32.totalorder %s1700_s8, 0 }
  0x7e   : > { %1292 = dma.done.wait (%p1711_p8), %s279_s11, 4096  }
  0x7f   : > { %1294 = vsyncadd (%p1711_p8), %s279_s11, 4294963200  ;;  %p313_p12 = scmp.lt.s32.totalorder %s1313_s25, 1  ;;  %p934_p9 = scmp.ne.s32.totalorder %s1309_s24, 0 }
  0x80   : > { %v1336_v0 = vmov (!%p934_p9), 0.0  }
  0x81   : > { %s314_s7 = scalar_select %p313_p12, %s1313_s25, 1 }
  0x82   : > { %322 = sbr.rel (%p934_p9) target bundleno = 137 (0x89), region = 60  ;;  %323 = vst [vmem:[#allocation2] sm:$0xff] (!%p934_p9), %v1336_v0  ;;  %324 = vst [vmem:[#allocation2 + $0x8] sm:$0xff] (!%p934_p9), %v1336_v0 }
  0x83   : > { %s991_s1 = sshll.u32 %s314_s7, 4  ;;  %325 = vst [vmem:[#allocation2 + $0x10] sm:$0xff] (!%p934_p9), %v1336_v0  ;;  %326 = vst [vmem:[#allocation2 + $0x18] sm:$0xff] (!%p934_p9), %v1336_v0 }
  0x84   : > { %s1586_s15 = scalar_lea.vmem %s1687_s6, %s991_s1 }
  0x89 PF: > { %s935_s8 = sshll.u32 %s1309_s24, 8  ;;  %v1337_v1 = vmov 0   ;;  %v1117_v2 = vld [vmem:[%s1575_s12 + $0x4] ss:$8 sps:$4 sm:$0xff]   ;;  %v1119_v3 = vld [vmem:[%s1575_s12] ss:$8 sps:$4 sm:$0xff]   ;;  %v353_v51 = vlaneseq }
  0x8a   : > { %s1590_s19 = sshra.s32 %s935_s8, 7  ;;  %481 = vmatprep.mubr.bf16.mxu0 %v1337_v1  ;;  %v1120_v4 = vld [vmem:[%s1575_s12 + $0x14] ss:$8 sps:$4 sm:$0xff]   ;;  %v1122_v5 = vld [vmem:[%s1575_s12 + $0x10] ss:$8 sps:$4 sm:$0xff]   ;;  %694 = vmatprep.subr.bf16.mxu1 %v1117_v2  ;;  %p986_p6 = scmp.ne.s32.totalorder %s1309_s24, 1 }
  0x8b   : > { %s936_s14 = sshll.u32 %s1590_s19, 2  ;;  %695 = vmatpush1.bf16.msra.mxu1 %v1119_v3  ;;  %v1123_v15 = vld [vmem:[%s1575_s12 + $0x24] ss:$8 sps:$4 sm:$0xff]   ;;  %v1125_v16 = vld [vmem:[%s1575_s12 + $0x20] ss:$8 sps:$4 sm:$0xff]   ;;  %v1116_v33 = vld [vmem:[#allocation3] sm:$0xff]   ;;  %s350_s20 = scalar_lea.vmem %s1683_s2, %s1590_s19 }
  0x8c   : > { %s1597_s29 = scalar_lea.vmem [#allocation5], %s936_s14  ;;  %696 = vmatprep.subr.bf16.mxu1 %v1120_v4  ;;  %v1126_v17 = vld [vmem:[%s1575_s12 + $0x34] ss:$8 sps:$4 sm:$0xff]   ;;  %v1128_v18 = vld [vmem:[%s1575_s12 + $0x30] ss:$8 sps:$4 sm:$0xff]   ;;  %v354_v52 = vshrl.u32 %v353_v51, 7 }
  0x8d   : > { %v1092_v6 = vld [vmem:[%s1597_s29 + $0x4] ss:$16 sps:$4 sm:$0xff]   ;;  %v1094_v7 = vld [vmem:[%s1597_s29] ss:$16 sps:$4 sm:$0xff]   ;;  %s987_s10 = sshll.u32 (!%p986_p6), %s1313_s25, 8  ;;  %s1712_s7 = sld [smem:[#allocation15_spill]] (!%p986_p6) }
  0x8e   : > { %449 = vmatprep.subr.bf16.mxu0 %v1092_v6  ;;  %v1095_v8 = vld [vmem:[%s1597_s29 + $0x24] ss:$16 sps:$4 sm:$0xff]   ;;  %v1097_v9 = vld [vmem:[%s1597_s29 + $0x20] ss:$16 sps:$4 sm:$0xff]   ;;  %v355_v53 = vsub.s32 0, %v354_v52  ;;  %v359_v55 = vsub.s32 1, %v354_v52 }
  0x8f   : > { %450 = vmatpush1.bf16.msra.mxu0 %v1094_v7  ;;  %v1098_v10 = vld [vmem:[%s1597_s29 + $0x44] ss:$16 sps:$4 sm:$0xff]   ;;  %697 = vmatpush1.bf16.msra.mxu1 %v1122_v5  ;;  %v1100_v11 = vld [vmem:[%s1597_s29 + $0x40] ss:$16 sps:$4 sm:$0xff]   ;;  %s754_s0 = sshra.s32 (!%p986_p6), %s987_s10, 7  ;;  %vm809_vm0 = vcmask (!%p986_p6), 7168  }
  0x90   : > { %451 = vmatprep.subr.bf16.mxu0 %v1095_v8  ;;  %v1101_v12 = vld [vmem:[%s1597_s29 + $0x64] ss:$16 sps:$4 sm:$0xff]   ;;  %v1103_v13 = vld [vmem:[%s1597_s29 + $0x60] ss:$16 sps:$4 sm:$0xff]   ;;  %698 = vmatprep.subr.bf16.mxu1 %v1123_v15  ;;  %s756_s9 = scalar_lea.vmem (!%p986_p6), %s1685_s4, %s754_s0 }
  0x91   : > { %v1104_v14 = vld [vmem:[%s1597_s29 + $0x84] ss:$16 sps:$4 sm:$0xff]   ;;  %v1106_v19 = vld [vmem:[%s1597_s29 + $0x80] ss:$16 sps:$4 sm:$0xff]  }
  0x92   : > { %v1129_v20 = vld [vmem:[%s1575_s12 + $0x44] ss:$8 sps:$4 sm:$0xff]   ;;  %v1131_v22 = vld [vmem:[%s1575_s12 + $0x40] ss:$8 sps:$4 sm:$0xff]   ;;  %v1132_v24 = vld [vmem:[%s1575_s12 + $0x54] ss:$8 sps:$4 sm:$0xff]  }
  0x93   : > { %452 = vmatpush1.bf16.msra.mxu0 %v1097_v9  ;;  %699 = vmatpush1.bf16.msra.mxu1 %v1125_v16  ;;  %v1107_v21 = vld [vmem:[%s1597_s29 + $0xa4] ss:$16 sps:$4 sm:$0xff]   ;;  %v1109_v23 = vld [vmem:[%s1597_s29 + $0xa0] ss:$16 sps:$4 sm:$0xff]   ;;  %v499_v9 = vld [vmem:[#allocation2 + $0x8] sm:$0xff]  ;;  %s777_s1 = scalar_lea.vmem (!%p986_p6), %s1712_s7, %s754_s0 }
  0x94   : > { %453 = vmatprep.subr.bf16.mxu0 %v1098_v10  ;;  %700 = vmatprep.subr.bf16.mxu1 %v1126_v17  ;;  %v1110_v25 = vld [vmem:[%s1597_s29 + $0xc4] ss:$16 sps:$4 sm:$0xff]   ;;  %v1134_v26 = vld [vmem:[%s1575_s12 + $0x50] ss:$8 sps:$4 sm:$0xff]   ;;  %v1137_v31 = vld [vmem:[%s1575_s12 + $0x60] ss:$8 sps:$4 sm:$0xff]  }
  0x95   : > { %v1112_v27 = vld [vmem:[%s1597_s29 + $0xc0] ss:$16 sps:$4 sm:$0xff]   ;;  %v1135_v28 = vld [vmem:[%s1575_s12 + $0x64] ss:$8 sps:$4 sm:$0xff]   ;;  %v1138_v32 = vld [vmem:[%s1575_s12 + $0x74] ss:$8 sps:$4 sm:$0xff]  }
  0x96   : > { %v1113_v29 = vld [vmem:[%s1597_s29 + $0xe4] ss:$16 sps:$4 sm:$0xff]   ;;  %v1115_v30 = vld [vmem:[%s1597_s29 + $0xe0] ss:$16 sps:$4 sm:$0xff]  }
  0x97   : > { %454 = vmatpush1.bf16.msra.mxu0 %v1100_v11  ;;  %701 = vmatpush1.bf16.msra.mxu1 %v1128_v18  ;;  %v1140_v34 = vld [vmem:[%s1575_s12 + $0x70] ss:$8 sps:$4 sm:$0xff]   ;;  %v1141_v35 = vld [vmem:[%s1575_s12 + $0x84] ss:$8 sps:$4 sm:$0xff]   ;;  %v1143_v36 = vld [vmem:[%s1575_s12 + $0x80] ss:$8 sps:$4 sm:$0xff]  }
  0x98   : > { %455 = vmatprep.subr.bf16.mxu0 %v1101_v12  ;;  %702 = vmatprep.subr.bf16.mxu1 %v1129_v20  ;;  %v1144_v37 = vld [vmem:[%s1575_s12 + $0x94] ss:$8 sps:$4 sm:$0xff]   ;;  %v1146_v38 = vld [vmem:[%s1575_s12 + $0x90] ss:$8 sps:$4 sm:$0xff]   ;;  %v1147_v39 = vld [vmem:[%s1575_s12 + $0xa4] ss:$8 sps:$4 sm:$0xff]  }
  0x99   : > { %v1149_v40 = vld [vmem:[%s1575_s12 + $0xa0] ss:$8 sps:$4 sm:$0xff]   ;;  %v1150_v41 = vld [vmem:[%s1575_s12 + $0xb4] ss:$8 sps:$4 sm:$0xff]   ;;  %v1152_v42 = vld [vmem:[%s1575_s12 + $0xb0] ss:$8 sps:$4 sm:$0xff]  }
  0x9a   : > { %v1153_v43 = vld [vmem:[%s1575_s12 + $0xc4] ss:$8 sps:$4 sm:$0xff]   ;;  %v1155_v44 = vld [vmem:[%s1575_s12 + $0xc0] ss:$8 sps:$4 sm:$0xff]   ;;  %v1156_v45 = vld [vmem:[%s1575_s12 + $0xd4] ss:$8 sps:$4 sm:$0xff]  }
  0x9b   : > { %456 = vmatpush1.bf16.msra.mxu0 %v1103_v13  ;;  %703 = vmatpush1.bf16.msra.mxu1 %v1131_v22  ;;  %v1158_v46 = vld [vmem:[%s1575_s12 + $0xd0] ss:$8 sps:$4 sm:$0xff]   ;;  %v1159_v47 = vld [vmem:[%s1575_s12 + $0xe4] ss:$8 sps:$4 sm:$0xff]   ;;  %v1161_v48 = vld [vmem:[%s1575_s12 + $0xe0] ss:$8 sps:$4 sm:$0xff]  }
  0x9c   : > { %457 = vmatprep.subr.bf16.mxu0 %v1104_v14  ;;  %704 = vmatprep.subr.bf16.mxu1 %v1132_v24  ;;  %v1162_v49 = vld [vmem:[%s1575_s12 + $0xf4] ss:$8 sps:$4 sm:$0xff]   ;;  %v1164_v50 = vld [vmem:[%s1575_s12 + $0xf0] ss:$8 sps:$4 sm:$0xff]   ;;  %v500_v11 = vld [vmem:[#allocation2 + $0x10] sm:$0xff] }
  0x9d   : > { %v351_v54 = vld [vmem:[%s350_s20] sm:$0x3]  ;;  %v501_v14 = vld [vmem:[#allocation2 + $0x18] sm:$0xff] }
  0x9e   : > { %v356_v56 = vrot.slane %v351_v54, %v355_v53  ;;  %v360_v57 = vrot.slane %v351_v54, %v359_v55  ;;  %v498_v8 = vld [vmem:[#allocation2] sm:$0xff] }
  0x9f   : > { %458 = vmatpush1.bf16.msra.mxu0 %v1106_v19  ;;  %705 = vmatpush1.bf16.msra.mxu1 %v1134_v26  ;;  %v778_v24 = vld [vmem:[%s777_s1] sm:$0x3] (!%p986_p6) }
  0xa0   : > { %459 = vmatprep.subr.bf16.mxu0 %v1107_v21  ;;  %706 = vmatprep.subr.bf16.mxu1 %v1135_v28  ;;  %v787_v21 = vsub.s32 (!%p986_p6), 2, %v354_v52 }
  0xa3   : > { %460 = vmatpush1.bf16.msra.mxu0 %v1109_v23  ;;  %707 = vmatpush1.bf16.msra.mxu1 %v1137_v31  ;;  %v757_v23 = vld [vmem:[%s756_s9] sm:$0x3] (!%p986_p6) }
  0xa4   : > { %461 = vmatprep.subr.bf16.mxu0 %v1110_v25  ;;  %708 = vmatprep.subr.bf16.mxu1 %v1138_v32  ;;  %v762_v25 = vrot.slane (!%p986_p6), %v757_v23, %v355_v53  ;;  %v766_v26 = vrot.slane (!%p986_p6), %v757_v23, %v359_v55 }
  0xa7   : > { %462 = vmatpush1.bf16.msra.mxu0 %v1112_v27  ;;  %709 = vmatpush1.bf16.msra.mxu1 %v1140_v34  ;;  %v779_v27 = vunpack.c.l.bf16 (!%p986_p6), %v778_v24 }
  0xa8   : > { %463 = vmatprep.subr.bf16.mxu0 %v1113_v29  ;;  %710 = vmatprep.subr.bf16.mxu1 %v1141_v35 }
  0xa9   : > { %v784_v32 = vrot.slane (!%p986_p6), %v779_v27, %v355_v53 }
  0xab   : > { %464 = vmatpush1.bf16.msra.mxu0 %v1115_v30  ;;  %711 = vmatpush1.bf16.msra.mxu1 %v1143_v36 }
  0xac   : > { %712 = vmatprep.subr.bf16.mxu1 %v1144_v37 }
  0xae   : > { %482 = vmatmul.mubr.bf16.vlgmr.msra.gmra.mrb[0].mxu0 %v1116_v33  ;;  %v788_v33 = vrot.slane (!%p986_p6), %v779_v27, %v787_v21 }
  0xaf   : > { %713 = vmatpush1.bf16.msra.mxu1 %v1146_v38  ;;  %v794_v38 = vrot.slane (!%p986_p6), %v784_v32, %v355_v53 }
  0xb0   : > { %714 = vmatprep.subr.bf16.mxu1 %v1147_v39  ;;  %v798_v39 = vrot.slane (!%p986_p6), %v788_v33, %v355_v53 }
  0xb3   : > { %715 = vmatpush1.bf16.msra.mxu1 %v1149_v40 }
  0xb4   : > { %716 = vmatprep.subr.bf16.mxu1 %v1150_v41 }
  0xb7   : > { %717 = vmatpush1.bf16.msra.mxu1 %v1152_v42 }
  0xb8   : > { %718 = vmatprep.subr.bf16.mxu1 %v1153_v43 }
  0xbb   : > { %719 = vmatpush1.bf16.msra.mxu1 %v1155_v44 }
  0xbc   : > { %720 = vmatprep.subr.bf16.mxu1 %v1156_v45 }
  0xbf   : > { %721 = vmatpush1.bf16.msra.mxu1 %v1158_v46 }
  0xc0   : > { %722 = vmatprep.subr.bf16.mxu1 %v1159_v47 }
  0xc3   : > { %723 = vmatpush1.bf16.msra.mxu1 %v1161_v48 }
  0xc4   : > { %724 = vmatprep.subr.bf16.mxu1 %v1162_v49 }
  0xc7   : > { %725 = vmatpush1.bf16.msra.mxu1 %v1164_v50 }
 0x181   : > { %v483_v58 = vpop.f32.mrb[0].mxu0 }
 0x182   : > { %v484_v59 = vadd.f32 %v483_v58, %v356_v56  ;;  %v485_v60 = vpop.f32.mrb[1].mxu0 }
 0x183   : > { %v486_v61 = vadd.f32 %v485_v60, %v360_v57  ;;  %v487_v62 = vpop.f32.mrb[2].mxu0 }
 0x184   : > { %v488_v63 = vadd.f32 %v487_v62, %v356_v56  ;;  %v489_v0 = vpop.f32.mrb[3].mxu0  ;;  %v492_v2 = vmax.f32 %v484_v59, 0.0 }
 0x185   : > { %v490_v1 = vadd.f32 %v489_v0, %v360_v57  ;;  %v493_v4 = vmax.f32 %v486_v61, 0.0 }
 0x186   : > { %v494_v3 = vmax.f32 %v488_v63, 0.0 }
 0x187   : > { %v495_v5 = vmax.f32 %v490_v1, 0.0 }
 0x188   : > { %v496_v6 = vpack.c.bf16 %v494_v3, %v492_v2 }
 0x189   : > { %v497_v7 = vpack.c.bf16 %v495_v5, %v493_v4 }
 0x18b   : > { %726 = vmatprep.mubr.bf16.mxu1 %v497_v7 }
 0x18c   : > { %727 = vmatmul.mubr.bf16.vlgmr.msra.gmra.mrb[0].mxu1 %v496_v6 }
 0x25f   : > { %v728_v10 = vpop.f32.mrb[0].mxu1  ;;  %748 = sbr.rel (%p986_p6) target bundleno = 774 (0x306), region = 64 }
 0x260   : > { %v737_v12 = vadd.f32 %v728_v10, %v498_v8  ;;  %v730_v13 = vpop.f32.mrb[1].mxu1 }
 0x261   : > { %v738_v15 = vadd.f32 %v730_v13, %v499_v9  ;;  %v732_v16 = vpop.f32.mrb[2].mxu1 }
 0x262   : > { %741 = vst [vmem:[#allocation2] sm:$0xff] %v737_v12  ;;  %v739_v17 = vadd.f32 %v732_v16, %v500_v11  ;;  %v734_v18 = vpop.f32.mrb[3].mxu1 }
 0x263   : > { %742 = vst [vmem:[#allocation2 + $0x8] sm:$0xff] %v738_v15  ;;  %v740_v19 = vadd.f32 %v734_v18, %v501_v14 }
 0x264   : > { %743 = vst [vmem:[#allocation2 + $0x10] sm:$0xff] %v739_v17 }
 0x265   : > { %744 = vst [vmem:[#allocation2 + $0x18] sm:$0xff] %v740_v19 }
 0x269   : > { %v750_v20 = vld [vmem:[#allocation2] sm:$0xff] }
 0x26a   : > { %v751_v22 = vld [vmem:[#allocation2 + $0x8] sm:$0xff]  ;;  %v769_v30 = vadd.f32 %v762_v25, %v750_v20 }
 0x26b   : > { %v752_v28 = vld [vmem:[#allocation2 + $0x10] sm:$0xff]  ;;  %v770_v31 = vadd.f32 %v766_v26, %v751_v22 }
 0x26c   : > { %v753_v29 = vld [vmem:[#allocation2 + $0x18] sm:$0xff]  ;;  %v771_v34 = vadd.f32 %v762_v25, %v752_v28  ;;  %v773_v36 = vmax.f32 %v769_v30, 0.0 }
 0x26d   : > { %v772_v35 = vadd.f32 %v766_v26, %v753_v29  ;;  %v774_v37 = vmax.f32 %v770_v31, 0.0 }
 0x26e   : > { %v775_v40 = vmax.f32 %v771_v34, 0.0  ;;  %v799_v42 = vmul.f32 %v794_v38, %v773_v36 }
 0x26f   : > { %v776_v41 = vmax.f32 %v772_v35, 0.0  ;;  %v800_v43 = vmul.f32 %v798_v39, %v774_v37 }
 0x270   : > { %v801_v44 = vmul.f32 %v794_v38, %v775_v40 }
 0x271   : > { %v802_v45 = vmul.f32 %v798_v39, %v776_v41  ;;  %v803_v46 = vadd.f32 %v800_v43, %v799_v42 }
 0x273   : > { %804 = vadd.xlane.f32.xlu0 %v803_v46  ;;  %v806_v47 = vadd.f32 %v802_v45, %v801_v44 }
 0x277   : > { %807 = vadd.xlane.f32.xlu0 %v806_v47 }
 0x300   : > { %v805_v48 = vpop.xlane.xlu0 %804 }
 0x301   : > { %810 = vst.msk [vmem:[%s1586_s15] sm:$0xff] %vm809_vm0, %v805_v48 }
 0x304   : > { %v808_v49 = vpop.xlane.xlu0 %807 }
 0x305   : > { %811 = vst.msk [vmem:[%s1586_s15 + $0x8] sm:$0xff] %vm809_vm0, %v808_v49 }
 0x306 PF: > { %s18_s28 = sadd.s32 1, %s1325_s28   ;;  %s1713_s24 = sld [smem:[#allocation11_spill]] }
 0x307   : > { %p15_p3 = scmp.ge.s32.totalorder %s18_s28, 6   ;;  %s1714_s5 = sld [smem:[#allocation12_spill]] }
 0x308   : > { %s1715_s21 = smov %s1301_s22  ;;  %s1716_s22 = smov %s1305_s23 }
 0x309   : > { %s1717_s23 = smov %s1531_s26  ;;  %s1718_s25 = smov %s1321_s27 }
 0x30a   : > { %s1720_s27 = smov %s1726_s18  ;;  %17 = sbr.rel (!%p15_p3) target bundleno = 9 (0x9), region = 103 }
 0x30d   : > { %s1719_s26 = smov %s1714_s5 }
 0x311   :  { %833 = vsyncpa [#allocation4], 1 }
 0x312   :  { %835 = vsyncpa [#allocation4 + $0x1], 1 }
 0x313   :  { %836 = vsyncpa [#allocation6], 1 }

</bundles_post_ra>
